<compile_context>
chip_gen: v5e
topology: v5e:2x2
jax: 0.10.0
libtpu: 0.0.40
codegen_flags: <defaults>
</compile_context>

<pallas_src>
import jax
import jax.numpy as jnp
from jax.experimental import pallas as pl
from jax.experimental.pallas import tpu as pltpu

HIDDEN = 64
OUT = 5
HP = 128   # hidden padded to full lane width
OP = 128   # output padded to full lane width


def _round_up(n, m):
    return ((n + m - 1) // m) * m


def textcnn_kernel(x_ref, w1_ref, b1_ref, w2_ref, b2_ref, w3_ref, b3_ref,
                   o_ref, acc_ref):
    k = pl.program_id(1)

    @pl.when(k == 0)
    def _():
        acc_ref[...] = jnp.zeros_like(acc_ref)

    # Conv1d center tap == matmul over the TFIDF feature axis (K-tiled).
    acc_ref[...] += jnp.dot(x_ref[...], w1_ref[...],
                            preferred_element_type=jnp.float32)

    @pl.when(k == pl.num_programs(1) - 1)
    def _():
        # bias + ReLU; AdaptiveMaxPool1d(1) / Flatten are identities on L=1.
        h1 = jnp.maximum(acc_ref[...] + b1_ref[...], 0.0)
        # Linear(64, 64) + ReLU (operands zero-padded to 128 lanes).
        h2 = jnp.dot(h1, w2_ref[...], preferred_element_type=jnp.float32)
        h2 = jnp.maximum(h2 + b2_ref[...], 0.0)
        # Linear(64, 5), written into a lane-dense 128-wide output slab.
        o_ref[...] = (jnp.dot(h2, w3_ref[...],
                              preferred_element_type=jnp.float32)
                      + b3_ref[...])


def textcnn_forward(x, conv_w, conv_b, fc1_w, fc1_b, fc2_w, fc2_b,
                    *, tile_b=512, tile_k=1024,
                    compute_dtype=jnp.bfloat16):
    """x: (B, D) float32. conv_w: (64, D, 3). fc1_w: (64, 64). fc2_w: (5, 64)."""
    B, D = x.shape

    # ---- weight prep in plain JAX (center tap, transpose, lane padding) ----
    w1 = jnp.transpose(conv_w[:, :, 1])                       # (D, 64)
    w1p = jnp.zeros((D, HP), jnp.float32).at[:, :HIDDEN].set(w1)
    b1p = jnp.zeros((1, HP), jnp.float32).at[0, :HIDDEN].set(conv_b)
    w2p = jnp.zeros((HP, HP), jnp.float32).at[:HIDDEN, :HIDDEN].set(fc1_w.T)
    b2p = jnp.zeros((1, HP), jnp.float32).at[0, :HIDDEN].set(fc1_b)
    w3p = jnp.zeros((HP, OP), jnp.float32).at[:HIDDEN, :OUT].set(fc2_w.T)
    b3p = jnp.zeros((1, OP), jnp.float32).at[0, :OUT].set(fc2_b)

    # ---- tiling: batch axis (parallel) x reduction axis over D (arbitrary) --
    TB = min(tile_b, _round_up(B, 8))        # multiple of 8 sublanes
    Bp = _round_up(B, TB)
    TK = min(tile_k, _round_up(D, 128))      # multiple of 128 lanes
    Dp = _round_up(D, TK)

    xp = jnp.pad(x, ((0, Bp - B), (0, Dp - D))).astype(compute_dtype)
    w1p = jnp.pad(w1p, ((0, Dp - D), (0, 0))).astype(compute_dtype)

    grid = (Bp // TB, Dp // TK)

    x_spec = pl.BlockSpec((TB, TK), lambda i, k: (i, k))
    w1_spec = pl.BlockSpec((TK, HP), lambda i, k: (k, 0))
    b1_spec = pl.BlockSpec((1, HP), lambda i, k: (0, 0))
    w2_spec = pl.BlockSpec((HP, HP), lambda i, k: (0, 0))
    b2_spec = pl.BlockSpec((1, HP), lambda i, k: (0, 0))
    w3_spec = pl.BlockSpec((HP, OP), lambda i, k: (0, 0))
    b3_spec = pl.BlockSpec((1, OP), lambda i, k: (0, 0))
    out_spec = pl.BlockSpec((TB, OP), lambda i, k: (i, 0))

    itemsize = jnp.dtype(compute_dtype).itemsize
    cost = pl.CostEstimate(
        flops=2 * Bp * Dp * HP + 2 * Bp * HP * HP + 2 * Bp * HP * OP,
        transcendentals=0,
        bytes_accessed=Bp * Dp * itemsize + Dp * HP * itemsize
                       + 2 * HP * HP * 4 + Bp * OP * 4,
    )

    out_padded = pl.pallas_call(
        textcnn_kernel,
        out_shape=jax.ShapeDtypeStruct((Bp, OP), jnp.float32),
        grid_spec=pltpu.PrefetchScalarGridSpec(
            num_scalar_prefetch=0,
            grid=grid,
            in_specs=[x_spec, w1_spec, b1_spec, w2_spec, b2_spec,
                      w3_spec, b3_spec],
            out_specs=out_spec,
            scratch_shapes=[pltpu.VMEM((TB, HP), jnp.float32)],
        ),
        compiler_params=pltpu.CompilerParams(
            dimension_semantics=("parallel", "arbitrary"),
            vmem_limit_bytes=48 * 1024 * 1024,
        ),
        cost_estimate=cost,
    )(xp, w1p, b1p, w2p, b2p, w3p, b3p)

    return out_padded[:B, :OUT]


def textcnn_reference(x, conv_w, conv_b, fc1_w, fc1_b, fc2_w, fc2_b):
    # Pure-JAX f32 reference implementing the full conv with zero padding on L=1.
    xl = x[:, :, None]                                        # (B, D, 1)
    xpad = jnp.pad(xl, ((0, 0), (0, 0), (1, 1)))              # (B, D, 3)
    y = jnp.einsum("ock,bck->bo", conv_w, xpad) + conv_b      # (B, 64)
    y = jnp.maximum(y, 0.0)
    y = jnp.max(y[:, :, None], axis=-1)                       # MaxPool1d(1) + flatten
    h = jnp.maximum(y @ fc1_w.T + fc1_b, 0.0)
    return h @ fc2_w.T + fc2_b


if __name__ == "__main__":
    B = 8          # batch
    D = 128        # input_dim (TFIDF feature dimension)

    key = jax.random.PRNGKey(0)
    kx, k1, k2, k3, k4, k5, k6 = jax.random.split(key, 7)

    x = jax.random.normal(kx, (B, D), dtype=jnp.float32)
    conv_w = jax.random.normal(k1, (64, D, 3), dtype=jnp.float32) * 0.05
    conv_b = jax.random.normal(k2, (64,), dtype=jnp.float32) * 0.05
    fc1_w = jax.random.normal(k3, (64, 64), dtype=jnp.float32) * 0.05
    fc1_b = jax.random.normal(k4, (64,), dtype=jnp.float32) * 0.05
    fc2_w = jax.random.normal(k5, (5, 64), dtype=jnp.float32) * 0.05
    fc2_b = jax.random.normal(k6, (5,), dtype=jnp.float32) * 0.05

    out = textcnn_forward(x, conv_w, conv_b, fc1_w, fc1_b, fc2_w, fc2_b)
    out = jax.block_until_ready(out)

    ref = textcnn_reference(x, conv_w, conv_b, fc1_w, fc1_b, fc2_w, fc2_b)
    assert out.shape == (B, 5)
    # x / w1 are fed to the MXU in bf16 (f32 accumulation), so tolerance is
    # relaxed relative to the pure-f32 reference.
    assert jnp.allclose(out, ref, atol=2e-2, rtol=2e-2), "mismatch vs reference"

    print("KERNEL_OK")
</pallas_src>

<mosaic_0001>
module attributes {stable_mosaic.version = 11 : i64} {
  func.func @textcnn_kernel(%arg0: i32, %arg1: i32, %arg2: memref<8x128xbf16, #tpu.memory_space<vmem>>, %arg3: memref<128x128xbf16, #tpu.memory_space<vmem>>, %arg4: memref<1x128xf32, #tpu.memory_space<vmem>>, %arg5: memref<128x128xf32, #tpu.memory_space<vmem>>, %arg6: memref<1x128xf32, #tpu.memory_space<vmem>>, %arg7: memref<128x128xf32, #tpu.memory_space<vmem>>, %arg8: memref<1x128xf32, #tpu.memory_space<vmem>>, %arg9: memref<8x128xf32, #tpu.memory_space<vmem>>, %arg10: memref<8x128xf32, #tpu.memory_space<vmem>>) attributes {dimension_semantics = [#tpu.dimension_semantics<parallel>, #tpu.dimension_semantics<arbitrary>], iteration_bounds = array<i64: 1, 1>, scalar_prefetch = 0 : i64, scratch_operands = 1 : i64, tpu.core_type = #tpu.core_type<tc>, window_params = [{transform_indices = @transform_0, window_bounds = array<i64: 8, 128>}, {transform_indices = @transform_1, window_bounds = array<i64: 128, 128>}, {pipeline_mode = #tpu.pipeline_mode<synchronous>, transform_indices = @transform_2, window_bounds = array<i64: 1, 128>}, {pipeline_mode = #tpu.pipeline_mode<synchronous>, transform_indices = @transform_3, window_bounds = array<i64: 128, 128>}, {pipeline_mode = #tpu.pipeline_mode<synchronous>, transform_indices = @transform_4, window_bounds = array<i64: 1, 128>}, {pipeline_mode = #tpu.pipeline_mode<synchronous>, transform_indices = @transform_5, window_bounds = array<i64: 128, 128>}, {pipeline_mode = #tpu.pipeline_mode<synchronous>, transform_indices = @transform_6, window_bounds = array<i64: 1, 128>}, {transform_indices = @transform_7, window_bounds = array<i64: 8, 128>}]} {
    %c0_i32 = arith.constant 0 : i32
    %0 = arith.cmpi eq, %arg1, %c0_i32 : i32
    %1 = arith.extui %0 : i1 to i32
    %c0_i32_0 = arith.constant 0 : i32
    %2 = arith.cmpi ne, %1, %c0_i32_0 : i32
    scf.if %2 {
      %cst_10 = arith.constant 0.000000e+00 : f32
      %12 = vector.broadcast %cst_10 : f32 to vector<8x128xf32>
      %c0_11 = arith.constant 0 : index
      %c0_12 = arith.constant 0 : index
      %13 = vector.load %arg10[%c0_11, %c0_12] : memref<8x128xf32, #tpu.memory_space<vmem>>, vector<8x128xf32>
      tpu.vector_store %arg10[%c0_11, %c0_12], %12 {strides = array<i32>} : memref<8x128xf32, #tpu.memory_space<vmem>>, vector<8x128xf32>,
    } else {
    }
    %c0 = arith.constant 0 : index
    %c0_1 = arith.constant 0 : index
    %3 = vector.load %arg10[%c0, %c0_1] : memref<8x128xf32, #tpu.memory_space<vmem>>, vector<8x128xf32>
    %c0_2 = arith.constant 0 : index
    %c0_3 = arith.constant 0 : index
    %4 = vector.load %arg2[%c0_2, %c0_3] : memref<8x128xbf16, #tpu.memory_space<vmem>>, vector<8x128xbf16>
    %c0_4 = arith.constant 0 : index
    %c0_5 = arith.constant 0 : index
    %5 = vector.load %arg3[%c0_4, %c0_5] : memref<128x128xbf16, #tpu.memory_space<vmem>>, vector<128x128xbf16>
    %cst = arith.constant dense<0.000000e+00> : vector<8x128xf32>
    %6 = tpu.matmul %4, %5, %cst {dimension_numbers = #tpu.dot_dimension_numbers<[1], [0], [0], [1], [0, 0, 1, 1], [], []>} : vector<8x128xbf16>, vector<128x128xbf16>, vector<8x128xf32> -> vector<8x128xf32>
    %7 = arith.addf %3, %6 : vector<8x128xf32>
    %c0_6 = arith.constant 0 : index
    %c0_7 = arith.constant 0 : index
    %8 = vector.load %arg10[%c0_6, %c0_7] : memref<8x128xf32, #tpu.memory_space<vmem>>, vector<8x128xf32>
    tpu.vector_store %arg10[%c0_6, %c0_7], %7 {strides = array<i32>} : memref<8x128xf32, #tpu.memory_space<vmem>>, vector<8x128xf32>,
    %c0_i32_8 = arith.constant 0 : i32
    %9 = arith.cmpi eq, %arg1, %c0_i32_8 : i32
    %10 = arith.extui %9 : i1 to i32
    %c0_i32_9 = arith.constant 0 : i32
    %11 = arith.cmpi ne, %10, %c0_i32_9 : i32
    scf.if %11 {
      %c0_10 = arith.constant 0 : index
      %c0_11 = arith.constant 0 : index
      %12 = vector.load %arg10[%c0_10, %c0_11] : memref<8x128xf32, #tpu.memory_space<vmem>>, vector<8x128xf32>
      %c0_12 = arith.constant 0 : index
      %c0_13 = arith.constant 0 : index
      %13 = vector.load %arg4[%c0_12, %c0_13] : memref<1x128xf32, #tpu.memory_space<vmem>>, vector<1x128xf32>
      %14 = vector.broadcast %13 : vector<1x128xf32> to vector<8x128xf32>
      %15 = arith.addf %12, %14 : vector<8x128xf32>
      %cst_14 = arith.constant 0.000000e+00 : f32
      %16 = vector.broadcast %cst_14 : f32 to vector<8x128xf32>
      %17 = arith.maximumf %15, %16 : vector<8x128xf32>
      %c0_15 = arith.constant 0 : index
      %c0_16 = arith.constant 0 : index
      %18 = vector.load %arg5[%c0_15, %c0_16] : memref<128x128xf32, #tpu.memory_space<vmem>>, vector<128x128xf32>
      %cst_17 = arith.constant dense<0.000000e+00> : vector<8x128xf32>
      %19 = tpu.matmul %17, %18, %cst_17 {dimension_numbers = #tpu.dot_dimension_numbers<[1], [0], [0], [1], [0, 0, 1, 1], [], []>} : vector<8x128xf32>, vector<128x128xf32>, vector<8x128xf32> -> vector<8x128xf32>
      %c0_18 = arith.constant 0 : index
      %c0_19 = arith.constant 0 : index
      %20 = vector.load %arg6[%c0_18, %c0_19] : memref<1x128xf32, #tpu.memory_space<vmem>>, vector<1x128xf32>
      %21 = vector.broadcast %20 : vector<1x128xf32> to vector<8x128xf32>
      %22 = arith.addf %19, %21 : vector<8x128xf32>
      %cst_20 = arith.constant 0.000000e+00 : f32
      %23 = vector.broadcast %cst_20 : f32 to vector<8x128xf32>
      %24 = arith.maximumf %22, %23 : vector<8x128xf32>
      %c0_21 = arith.constant 0 : index
      %c0_22 = arith.constant 0 : index
      %25 = vector.load %arg7[%c0_21, %c0_22] : memref<128x128xf32, #tpu.memory_space<vmem>>, vector<128x128xf32>
      %cst_23 = arith.constant dense<0.000000e+00> : vector<8x128xf32>
      %26 = tpu.matmul %24, %25, %cst_23 {dimension_numbers = #tpu.dot_dimension_numbers<[1], [0], [0], [1], [0, 0, 1, 1], [], []>} : vector<8x128xf32>, vector<128x128xf32>, vector<8x128xf32> -> vector<8x128xf32>
      %c0_24 = arith.constant 0 : index
      %c0_25 = arith.constant 0 : index
      %27 = vector.load %arg8[%c0_24, %c0_25] : memref<1x128xf32, #tpu.memory_space<vmem>>, vector<1x128xf32>
      %28 = vector.broadcast %27 : vector<1x128xf32> to vector<8x128xf32>
      %29 = arith.addf %26, %28 : vector<8x128xf32>
      %c0_26 = arith.constant 0 : index
      %c0_27 = arith.constant 0 : index
      %30 = vector.load %arg9[%c0_26, %c0_27] : memref<8x128xf32, #tpu.memory_space<vmem>>, vector<8x128xf32>
      tpu.vector_store %arg9[%c0_26, %c0_27], %29 {strides = array<i32>} : memref<8x128xf32, #tpu.memory_space<vmem>>, vector<8x128xf32>,
    } else {
    }
    return
  }
  func.func @transform_0(%arg0: i32, %arg1: i32) -> (i32, i32) {
    %c0_i32 = arith.constant 0 : i32
    return %arg0, %arg1 : i32, i32
  }
  func.func @transform_1(%arg0: i32, %arg1: i32) -> (i32, i32) {
    %c0_i32 = arith.constant 0 : i32
    %c0_i32_0 = arith.constant 0 : i32
    return %arg1, %c0_i32 : i32, i32
  }
  func.func @transform_2(%arg0: i32, %arg1: i32) -> (i32, i32) {
    %c0_i32 = arith.constant 0 : i32
    %c0_i32_0 = arith.constant 0 : i32
    %c0_i32_1 = arith.constant 0 : i32
    return %c0_i32, %c0_i32_0 : i32, i32
  }
  func.func @transform_3(%arg0: i32, %arg1: i32) -> (i32, i32) {
    %c0_i32 = arith.constant 0 : i32
    %c0_i32_0 = arith.constant 0 : i32
    %c0_i32_1 = arith.constant 0 : i32
    return %c0_i32, %c0_i32_0 : i32, i32
  }
  func.func @transform_4(%arg0: i32, %arg1: i32) -> (i32, i32) {
    %c0_i32 = arith.constant 0 : i32
    %c0_i32_0 = arith.constant 0 : i32
    %c0_i32_1 = arith.constant 0 : i32
    return %c0_i32, %c0_i32_0 : i32, i32
  }
  func.func @transform_5(%arg0: i32, %arg1: i32) -> (i32, i32) {
    %c0_i32 = arith.constant 0 : i32
    %c0_i32_0 = arith.constant 0 : i32
    %c0_i32_1 = arith.constant 0 : i32
    return %c0_i32, %c0_i32_0 : i32, i32
  }
  func.func @transform_6(%arg0: i32, %arg1: i32) -> (i32, i32) {
    %c0_i32 = arith.constant 0 : i32
    %c0_i32_0 = arith.constant 0 : i32
    %c0_i32_1 = arith.constant 0 : i32
    return %c0_i32, %c0_i32_0 : i32, i32
  }
  func.func @transform_7(%arg0: i32, %arg1: i32) -> (i32, i32) {
    %c0_i32 = arith.constant 0 : i32
    %c0_i32_0 = arith.constant 0 : i32
    return %arg0, %c0_i32 : i32, i32
  }
}

</mosaic_0001>

<bundles_post_ra>
// kernel: tpu_custom_call.1
= control target key start
LH: loop header
LB: loop body
LE: loop exit
PB: predicated region body
PF: predicated region fallthrough
CT: control target
= control target key end

     0   :  { %12 = vsyncpa [#allocation4], 0  ;;  %s538_s0 = inlined_call_operand.hbm [shape: bf16[8,128], index: 0, kind: input, shape index: {}]   ;;  %s539_s1 = inlined_call_operand.hbm [shape: bf16[128,128], index: 1, kind: input, shape index: {}]   ;;  %s540_s2 = inlined_call_operand.vmem [shape: f32[1,128], index: 2, kind: input, shape index: {}]   ;;  %s541_s3 = inlined_call_operand.hbm [shape: f32[128,128], index: 3, kind: input, shape index: {}]   ;;  %s542_s4 = inlined_call_operand.vmem [shape: f32[1,128], index: 4, kind: input, shape index: {}]   ;;  %s543_s5 = inlined_call_operand.hbm [shape: f32[128,128], index: 5, kind: input, shape index: {}]   ;;  %s544_s6 = inlined_call_operand.vmem [shape: f32[1,128], index: 6, kind: input, shape index: {}]   ;;  %s545_s7 = inlined_call_operand.hbm [shape: f32[8,128], index: 7, kind: output, shape index: {}]  }
   0x1   :  { %13 = vsyncpa [#allocation7], 0 }
   0x2   :  { %14 = vsyncpa [#allocation10], 0  ;;  %s31_s26 = sshll.u32 %s539_s1, 4  ;;  %s32_s26 = int_to_ptr.hbm [resolvable:$true] %s31_s26 }
   0x3   :  { %15 = vsyncpa [#allocation5], 0  ;;  %s465_s27 = smov [#allocation6]   ;;  %s21_s8 = sshll.u32 %s538_s0, 4  ;;  %s22_s8 = int_to_ptr.hbm [resolvable:$true] %s21_s8 }
   0x4   :  { %s33_s28 = sshll.u32 %s465_s27, 4  ;;  %s466_s9 = smov 64   ;;  %s34_s28 = int_to_ptr.vmem [resolvable:$true] %s33_s28 }
   0x5   :  { %s467_s10 = smov 4   ;;  %s468_s11 = smov [#allocation3]  }
   0x6   :  { %39 = dma.hbm_to_vmem [thread:$0]  %s32_s26, 1024, %s34_s28, [#allocation7], %s466_s9, %s466_s9, %s467_s10  }
   0x7   :  { %s23_s12 = sshll.u32 %s468_s11, 4  ;;  %s46_s15 = sshll.u32 %s541_s3, 4  ;;  %s24_s12 = int_to_ptr.vmem [resolvable:$true] %s23_s12  ;;  %s47_s15 = int_to_ptr.hbm [resolvable:$true] %s46_s15 }
   0x8   :  { %26 = dma.hbm_to_vmem [thread:$0]  %s22_s8, 64, %s24_s12, [#allocation4]  }
   0x9   :  { %s469_s1 = smov [#allocation8]   ;;  %s61_s0 = sshll.u32 %s543_s5, 4  ;;  %s62_s0 = int_to_ptr.hbm [resolvable:$true] %s61_s0 }
   0xa   :  { %s48_s16 = sshll.u32 %s469_s1, 4  ;;  %s470_s19 = smov 128   ;;  %s49_s16 = int_to_ptr.vmem [resolvable:$true] %s48_s16 }
   0xb   :  { %s471_s20 = smov 8   ;;  %s472_s21 = smov [#allocation9]  }
   0xc   :  { %54 = dma.hbm_to_vmem [thread:$0]  %s47_s15, 2048, %s49_s16, [#allocation7], %s470_s19, %s470_s19, %s471_s20  }
   0xd   :  { %s63_s22 = sshll.u32 %s472_s21, 4  ;;  %s64_s22 = int_to_ptr.vmem [resolvable:$true] %s63_s22 }
   0xe   :  { %69 = dma.hbm_to_vmem [thread:$0]  %s62_s0, 2048, %s64_s22, [#allocation10], %s470_s19, %s470_s19, %s471_s20  }
   0xf   :  { %457 = dma.done.wait [#allocation4], 64  }
  0x10   :  { %458 = vsyncadd [#allocation4], 4294967232 }
  0x11   :  { %459 = dma.done.wait [#allocation7], 3072  }
  0x12   :  { %460 = vsyncadd [#allocation7], 4294964224 }
  0x13   :  { %461 = dma.done.wait [#allocation10], 2048  }
  0x14   :  { %462 = vsyncadd [#allocation10], 4294965248  ;;  %v324_v0 = vld [vmem:[#allocation6 + $0x38] sm:$0xff]  ;;  %v323_v1 = vld [vmem:[#allocation6 + $0x30] sm:$0xff]  ;;  %s473_s26 = smov [#allocation11]   ;;  %s273_s30 = sshll.u32 %s545_s7, 4  ;;  %s274_s30 = int_to_ptr.hbm [resolvable:$true] %s273_s30 }
  0x15   :  { %159 = vmatpush.bf16.msra.mxu0 %v324_v0  ;;  %v199_v2 = vld [vmem:[#allocation8 + $0x78] sm:$0xff]  ;;  %v198_v3 = vld [vmem:[#allocation8 + $0x70] sm:$0xff]  ;;  %v197_v4 = vld [vmem:[#allocation8 + $0x68] sm:$0xff]  ;;  %s271_s27 = sshll.u32 %s473_s26, 4  ;;  %s272_s27 = int_to_ptr.vmem [resolvable:$true] %s271_s27 }
  0x16   :  { %204 = vmatpush.msra.mxu1 %v199_v2  ;;  %v322_v5 = vld [vmem:[#allocation6 + $0x28] sm:$0xff]  ;;  %v196_v6 = vld [vmem:[#allocation8 + $0x60] sm:$0xff]  ;;  %v195_v7 = vld [vmem:[#allocation8 + $0x58] sm:$0xff] }
  0x17   :  { %v321_v8 = vld [vmem:[#allocation6 + $0x20] sm:$0xff]  ;;  %v194_v9 = vld [vmem:[#allocation8 + $0x50] sm:$0xff]  ;;  %v193_v10 = vld [vmem:[#allocation8 + $0x48] sm:$0xff] }
  0x18   :  { %205 = vmatpush.msra.mxu1 %v198_v3  ;;  %v320_v11 = vld [vmem:[#allocation6 + $0x18] sm:$0xff]  ;;  %v192_v12 = vld [vmem:[#allocation8 + $0x40] sm:$0xff]  ;;  %v319_v14 = vld [vmem:[#allocation6 + $0x10] sm:$0xff] }
  0x19   :  { %160 = vmatpush.bf16.msra.mxu0 %v323_v1  ;;  %v191_v13 = vld [vmem:[#allocation8 + $0x38] sm:$0xff]  ;;  %v190_v15 = vld [vmem:[#allocation8 + $0x30] sm:$0xff]  ;;  %v189_v16 = vld [vmem:[#allocation8 + $0x28] sm:$0xff] }
  0x1a   :  { %206 = vmatpush.msra.mxu1 %v197_v4  ;;  %v318_v17 = vld [vmem:[#allocation6 + $0x8] sm:$0xff]  ;;  %v188_v18 = vld [vmem:[#allocation8 + $0x20] sm:$0xff]  ;;  %v187_v19 = vld [vmem:[#allocation8 + $0x18] sm:$0xff] }
  0x1b   :  { %v317_v20 = vld [vmem:[#allocation6] sm:$0xff]  ;;  %v94_v21 = vld [vmem:[#allocation3] sm:$0xf]  ;;  %v186_v22 = vld [vmem:[#allocation8 + $0x10] sm:$0xff] }
  0x1c   :  { %207 = vmatpush.msra.mxu1 %v196_v6  ;;  %v185_v23 = vld [vmem:[#allocation8 + $0x8] sm:$0xff]  ;;  %v184_v24 = vld [vmem:[#allocation8] sm:$0xff]  ;;  %v240_v25 = vld [vmem:[#allocation9 + $0x78] sm:$0xff] }
  0x1d   :  { %161 = vmatpush.bf16.msra.mxu0 %v322_v5  ;;  %v239_v26 = vld [vmem:[#allocation9 + $0x70] sm:$0xff]  ;;  %245 = vmatpush.msra.mxu2 %v240_v25  ;;  %v238_v27 = vld [vmem:[#allocation9 + $0x68] sm:$0xff]  ;;  %v237_v28 = vld [vmem:[#allocation9 + $0x60] sm:$0xff] }
  0x1e   :  { %208 = vmatpush.msra.mxu1 %v195_v7  ;;  %v236_v29 = vld [vmem:[#allocation9 + $0x58] sm:$0xff]  ;;  %v235_v30 = vld [vmem:[#allocation9 + $0x50] sm:$0xff]  ;;  %v234_v31 = vld [vmem:[#allocation9 + $0x48] sm:$0xff] }
  0x1f   :  { %246 = vmatpush.msra.mxu2 %v239_v26  ;;  %v233_v32 = vld [vmem:[#allocation9 + $0x40] sm:$0xff]  ;;  %v232_v33 = vld [vmem:[#allocation9 + $0x38] sm:$0xff]  ;;  %v231_v34 = vld [vmem:[#allocation9 + $0x30] sm:$0xff] }
  0x20   :  { %209 = vmatpush.msra.mxu1 %v194_v9  ;;  %v230_v35 = vld [vmem:[#allocation9 + $0x28] sm:$0xff]  ;;  %v229_v36 = vld [vmem:[#allocation9 + $0x20] sm:$0xff]  ;;  %v334_v37 = vld [vmem:[%s540_s2] ss:$0 sm:$0xff] }
  0x21   :  { %162 = vmatpush.bf16.msra.mxu0 %v321_v8  ;;  %247 = vmatpush.msra.mxu2 %v238_v27  ;;  %v228_v38 = vld [vmem:[#allocation9 + $0x18] sm:$0xff]  ;;  %v227_v43 = vld [vmem:[#allocation9 + $0x10] sm:$0xff]  ;;  %v226_v44 = vld [vmem:[#allocation9 + $0x8] sm:$0xff] }
  0x22   :  { %210 = vmatpush.msra.mxu1 %v193_v10  ;;  %v225_v45 = vld [vmem:[#allocation9] sm:$0xff]  ;;  %v335_v46 = vld [vmem:[%s542_s4] ss:$0 sm:$0xff] }
  0x23   :  { %248 = vmatpush.msra.mxu2 %v237_v28  ;;  %v336_v50 = vld [vmem:[%s544_s6] ss:$0 sm:$0xff] }
  0x24   :  { %211 = vmatpush.msra.mxu1 %v192_v12 }
  0x25   :  { %163 = vmatpush.bf16.msra.mxu0 %v320_v11  ;;  %249 = vmatpush.msra.mxu2 %v236_v29 }
  0x26   :  { %212 = vmatpush.msra.mxu1 %v191_v13 }
  0x27   :  { %250 = vmatpush.msra.mxu2 %v235_v30 }
  0x28   :  { %213 = vmatpush.msra.mxu1 %v190_v15 }
  0x29   :  { %164 = vmatpush.bf16.msra.mxu0 %v319_v14  ;;  %251 = vmatpush.msra.mxu2 %v234_v31 }
  0x2a   :  { %214 = vmatpush.msra.mxu1 %v189_v16 }
  0x2b   :  { %252 = vmatpush.msra.mxu2 %v233_v32 }
  0x2c   :  { %215 = vmatpush.msra.mxu1 %v188_v18 }
  0x2d   :  { %165 = vmatpush.bf16.msra.mxu0 %v318_v17  ;;  %253 = vmatpush.msra.mxu2 %v232_v33 }
  0x2e   :  { %216 = vmatpush.msra.mxu1 %v187_v19 }
  0x2f   :  { %254 = vmatpush.msra.mxu2 %v231_v34 }
  0x30   :  { %217 = vmatpush.msra.mxu1 %v186_v22 }
  0x31   :  { %166 = vmatpush.bf16.msra.mxu0 %v317_v20  ;;  %255 = vmatpush.msra.mxu2 %v230_v35 }
  0x32   :  { %218 = vmatpush.msra.mxu1 %v185_v23 }
  0x33   :  { %256 = vmatpush.msra.mxu2 %v229_v36 }
  0x34   :  { %167 = vmatmul.bf16.vlgmr.msra.gmra.mxu0 %v94_v21  ;;  %219 = vmatpush.msra.mxu1 %v184_v24 }
  0x35   :  { %257 = vmatpush.msra.mxu2 %v228_v38 }
  0x37   :  { %258 = vmatpush.msra.mxu2 %v227_v43 }
  0x39   :  { %259 = vmatpush.msra.mxu2 %v226_v44 }
  0x3b   :  { %260 = vmatpush.msra.mxu2 %v225_v45 }
  0xb1   :  { %v168_v39 = vpop.f32.mrf.mxu0 }
  0xb2   :  { %v182_v40 = vadd.f32 %v334_v37, %v168_v39 }
  0xb4   :  { %v183_v41 = vmax.f32 %v182_v40, 0.0 }
  0xb6   :  { %220 = vmatmul.f32.vlgmr.msra.gmra.mxu1 %v183_v41 }
  0xb9   :  { %v170_v42 = vpop.f32.mrf.mxu0 }
 0x133   :  { %v221_v47 = vpop.f32.mrf.mxu1 }
 0x134   :  { %v222_v48 = vadd.f32 %v335_v46, %v221_v47 }
 0x136   :  { %v224_v49 = vmax.f32 %v222_v48, 0.0 }
 0x138   :  { %261 = vmatmul.f32.vlgmr.msra.gmra.mxu2 %v224_v49 }
 0x1bb   :  { %v262_v51 = vpop.f32.mrf.mxu2 }
 0x1bc   :  { %v263_v52 = vadd.f32 %v336_v50, %v262_v51 }
 0x1be   :  { %265 = vst [vmem:[#allocation11] sm:$0xff] %v263_v52 }
 0x1bf   :  { %276 = dma.vmem_to_hbm [thread:$0]  %s272_s27, 128, %s274_s30, [#allocation5]  }
 0x1c0   :  { %463 = dma.done.wait [#allocation5], 128  }
 0x1c1   :  { %464 = vsyncadd [#allocation5], 4294967168 }
 0x1c2   :  { %281 = vsyncpa [#allocation4], 1 }
 0x1c3   :  { %282 = vsyncpa [#allocation7], 1 }
 0x1c4   :  { %283 = vsyncpa [#allocation10], 1 }
 0x1c5   :  { %284 = vsyncpa [#allocation5], 1 }

</bundles_post_ra>
